<compile_context>
chip_gen: v7x
topology: tpu7x:2x2x1
jax: 0.10.0
libtpu: 0.0.40
codegen_flags: <defaults>
</compile_context>

<pallas_src>
import jax
import jax.numpy as jnp
from jax import lax
from jax.experimental import pallas as pl
from jax.experimental.pallas import tpu as pltpu

# ---- model hyperparameters (consistent with the module) -------------------
NUM_HEADS = 2
HEAD_OUTPUT_DIM = 1
HEAD_SIZE = 8
CONTEXT_LEN = 8
BATCH = 2
EMBED = NUM_HEADS * HEAD_OUTPUT_DIM          # must be 2 for the module's shapes
INNER = 4 * EMBED                            # FeedForward inner dim
N_TOKENS = BATCH * CONTEXT_LEN               # flattened (batch*context) rows
DROPOUT = 0.0                                # dropout is never applied in forward()

# ---- packed-parameter buffer layout (sublane-aligned, 128 lanes wide) ------
QKV_COLS = 3 * NUM_HEADS * HEAD_SIZE         # 48
Q_OFF = 0
K_OFF = NUM_HEADS * HEAD_SIZE                # 16
V_OFF = 2 * NUM_HEADS * HEAD_SIZE            # 32


def _ru8(n):                                  # round up to a sublane group (8 rows)
    return (n + 7) & ~7


ROW_QKV = 0                                             # (EMBED, 48)   fused QKV weight
ROW_PROJ = _ru8(ROW_QKV + EMBED)                        # (NH*HS, 128)  folded Wo·Wlb (lanes 0:2)
ROW_W1 = _ru8(ROW_PROJ + NUM_HEADS * HEAD_SIZE)         # (EMBED, 128)  ffwd W1 (lanes 0:INNER)
ROW_B1 = _ru8(ROW_W1 + EMBED)                           # (1, 128)      ffwd b1
ROW_W2 = _ru8(ROW_B1 + 1)                               # (INNER, 128)  ffwd W2 (lanes 0:EMBED)
ROW_B2 = _ru8(ROW_W2 + INNER)                           # (1, 128)      ffwd b2
ROW_PE = _ru8(ROW_B2 + 1)                               # (N, 128)      batch-tiled pos-enc
ROW_MASK = _ru8(ROW_PE + N_TOKENS)                      # (N, N)        additive causal-mask bias
PARAM_ROWS = _ru8(ROW_MASK + N_TOKENS)                  # 88
PARAM_COLS = 128
OUT_COLS = 128                                          # lane-dense padded output width


# ----------------------------- Pallas kernel ------------------------------
def transformer_block_kernel(x_ref, params_ref, out_ref, o_all_ref):
    x = x_ref[...]                                            # (N, 128): data in lanes 0:EMBED
    N = x.shape[0]

    # static, sublane-aligned slices of the single packed params buffer
    wqkv = params_ref[ROW_QKV:ROW_QKV + EMBED, :]                           # (2, 128) Q|K|V in 0:48
    wproj = params_ref[ROW_PROJ:ROW_PROJ + NUM_HEADS * HEAD_SIZE, :]        # (16, 128) data lanes 0:2
    w1 = params_ref[ROW_W1:ROW_W1 + EMBED, :]                               # (2, 128) data lanes 0:INNER
    b1 = params_ref[ROW_B1:ROW_B1 + 1, :]                                   # (1, 128)
    w2 = params_ref[ROW_W2:ROW_W2 + INNER, :]                               # (INNER, 128) data lanes 0:2
    b2 = params_ref[ROW_B2:ROW_B2 + 1, :]                                   # (1, 128)
    pe = params_ref[ROW_PE:ROW_PE + N, :]                                   # (N, 128) data lanes 0:2
    mask_bias = params_ref[ROW_MASK:ROW_MASK + N, 0:N_TOKENS]               # (N, N) 0 / -1e30

    # PositionEncoding is applied inside MultiHeadAttention only
    xp = x + pe                                                             # (N, 128)

    # Fused Q/K/V projection for all heads.  Contraction depth is EMBED=2, so
    # use VPU broadcast-MACs instead of a tiny MXU push.
    qkv = xp[:, 0:1] * wqkv[0:1, :]
    for d in range(1, EMBED):
        qkv = qkv + xp[:, d:d + 1] * wqkv[d:d + 1, :]                       # (N, 128): real in 0:48

    scale = jnp.float32(HEAD_SIZE ** (-0.5))

    # Multi-head attention.  Each head writes its output into the (N, NH*HS)
    # VMEM scratch; the head-concat @ (Wo^T·Wlb) projection happens once
    # after the loop (single MXU push).
    for h in range(NUM_HEADS):
        q = qkv[:, Q_OFF + h * HEAD_SIZE: Q_OFF + (h + 1) * HEAD_SIZE]      # (N, HS)
        k = qkv[:, K_OFF + h * HEAD_SIZE: K_OFF + (h + 1) * HEAD_SIZE]      # (N, HS)
        v = qkv[:, V_OFF + h * HEAD_SIZE: V_OFF + (h + 1) * HEAD_SIZE]      # (N, HS)

        wei = lax.dot_general(q, k, (((1,), (1,)), ((), ())),
                              preferred_element_type=jnp.float32) * scale   # (N, N)
        wei = wei + mask_bias                                               # additive causal mask
        wei = wei - jnp.max(wei, axis=-1, keepdims=True)
        p = jnp.exp(wei)
        p = p / jnp.sum(p, axis=-1, keepdims=True)                          # exact softmax

        o = jnp.dot(p, v, preferred_element_type=jnp.float32)               # (N, HS)
        o_all_ref[:, h * HEAD_SIZE:(h + 1) * HEAD_SIZE] = o

    # single fused output projection for all heads (host-folded Wo^T·Wlb)
    sa = jnp.dot(o_all_ref[...], wproj, preferred_element_type=jnp.float32)  # (N, 128), lanes 2+ zero

    # first residual (padding lanes stay zero)
    x1 = x + sa                                                             # (N, 128)

    # FeedForward: Linear(D->INNER) -> ReLU -> Linear(INNER->D)
    # layer-1 contraction depth is D=2 -> VPU broadcast-MACs again
    h1 = x1[:, 0:1] * w1[0:1, :]
    for d in range(1, EMBED):
        h1 = h1 + x1[:, d:d + 1] * w1[d:d + 1, :]
    h1 = jnp.maximum(h1 + b1, 0.0)                                          # (N, 128), real in 0:INNER
    ff = jnp.dot(h1[:, 0:INNER], w2, preferred_element_type=jnp.float32) + b2  # (N, 128), lanes 2+ zero

    # second residual; full-tile, lane-dense, unmasked store
    out_ref[...] = (x1 + ff).astype(out_ref.dtype)


def transformer_block(x, params):
    B, C, D = x.shape
    N = B * C
    x2 = x.reshape(N, D)
    # lane-pad the input to 128 so every residual / store is a full-tile op
    x_pad = jnp.zeros((N, OUT_COLS), jnp.float32).at[:, :D].set(x2)
    out = pl.pallas_call(
        transformer_block_kernel,
        out_shape=jax.ShapeDtypeStruct((N, OUT_COLS), jnp.float32),
        # single invocation, no grid: whole problem fits in VMEM; explicit
        # memory_space pins both inputs as whole-array VMEM blocks (2 DMAs).
        in_specs=[pl.BlockSpec(memory_space=pltpu.MemorySpace.VMEM),
                  pl.BlockSpec(memory_space=pltpu.MemorySpace.VMEM)],
        out_specs=pl.BlockSpec(memory_space=pltpu.MemorySpace.VMEM),
        scratch_shapes=[pltpu.VMEM((N, NUM_HEADS * HEAD_SIZE), jnp.float32)],
    )(x_pad, params)
    return out[:, :D].reshape(B, C, D)


# ----------------------- pure-JAX reference (torch math) -------------------
def reference(x, pe, Wk, Wq, Wv, Wo, Wlb, W1, b1, W2, b2):
    C = x.shape[1]
    xp = x + pe[None]
    tril = jnp.tril(jnp.ones((C, C), jnp.float32))
    outs = []
    for h in range(NUM_HEADS):
        k = xp @ Wk[h].T
        q = xp @ Wq[h].T
        wei = q @ jnp.swapaxes(k, -2, -1) * HEAD_SIZE ** (-0.5)
        wei = jnp.where(tril == 0, -jnp.inf, wei)
        wei = jax.nn.softmax(wei, axis=-1)
        v = xp @ Wv[h].T
        o = (wei @ v) @ Wo[h].T
        outs.append(o)
    sa = jnp.concatenate(outs, axis=-1) @ Wlb.T
    x1 = x + sa
    ff = jax.nn.relu(x1 @ W1.T + b1) @ W2.T + b2
    return x1 + ff


# --------------------------- parameter helpers ------------------------------
def uniform_init(key, shape, fan_in):
    bound = 1.0 / (fan_in ** 0.5)
    return jax.random.uniform(key, shape, jnp.float32, -bound, bound)


def make_position_encoding(max_len, d_model):
    pe = jnp.zeros((max_len, d_model), jnp.float32)
    position = jnp.arange(max_len, dtype=jnp.float32)[:, None]
    embedding_index = jnp.arange(0, d_model, 2, dtype=jnp.float32)
    div_term = 1.0 / (10000.0 ** (embedding_index / d_model))
    pe = pe.at[:, 0::2].set(jnp.sin(position * div_term))
    pe = pe.at[:, 1::2].set(jnp.cos(position * div_term))
    return pe


def pack_params(Wk, Wq, Wv, Wo, Wlb, W1, b1, W2, b2, pe, batch):
    """Host-side packing of all weights + mask into one (PARAM_ROWS, 128) buffer."""
    # fused QKV weight, (EMBED, 3*NH*HS); column blocks [Q | K | V], head-major
    wq_t = jnp.concatenate([Wq[h].T for h in range(NUM_HEADS)], axis=1)
    wk_t = jnp.concatenate([Wk[h].T for h in range(NUM_HEADS)], axis=1)
    wv_t = jnp.concatenate([Wv[h].T for h in range(NUM_HEADS)], axis=1)
    wqkv = jnp.concatenate([wq_t, wk_t, wv_t], axis=1)                    # (2, 48)

    # pre-fold Wo_h^T @ Wlb_h  -> per-head (HEAD_SIZE, EMBED) projection (exact)
    wlb_t = Wlb.T                                                         # (NH*HOD, 2)
    wproj = jnp.concatenate(
        [Wo[h].T @ wlb_t[h * HEAD_OUTPUT_DIM:(h + 1) * HEAD_OUTPUT_DIM, :]
         for h in range(NUM_HEADS)], axis=0)                              # (NH*HS, 2)

    n = batch * CONTEXT_LEN
    pe_tiled = jnp.tile(pe, (batch, 1))                                   # (N, 2)

    # block-diagonal causal mask over flattened rows as an ADDITIVE f32 bias
    ridx = jnp.arange(n)[:, None]
    cidx = jnp.arange(n)[None, :]
    keep = ((ridx // CONTEXT_LEN) == (cidx // CONTEXT_LEN)) & \
           ((cidx % CONTEXT_LEN) <= (ridx % CONTEXT_LEN))
    mask_bias = jnp.where(keep, 0.0, -1e30).astype(jnp.float32)           # (N, N)

    params = jnp.zeros((PARAM_ROWS, PARAM_COLS), jnp.float32)
    params = params.at[ROW_QKV:ROW_QKV + EMBED, 0:QKV_COLS].set(wqkv)
    params = params.at[ROW_PROJ:ROW_PROJ + NUM_HEADS * HEAD_SIZE, 0:EMBED].set(wproj)
    params = params.at[ROW_W1:ROW_W1 + EMBED, 0:INNER].set(W1.T)
    params = params.at[ROW_B1, 0:INNER].set(b1)
    params = params.at[ROW_W2:ROW_W2 + INNER, 0:EMBED].set(W2.T)
    params = params.at[ROW_B2, 0:EMBED].set(b2)
    params = params.at[ROW_PE:ROW_PE + n, 0:EMBED].set(pe_tiled)
    params = params.at[ROW_MASK:ROW_MASK + n, 0:n].set(mask_bias)
    return params


if __name__ == "__main__":
    root = jax.random.PRNGKey(0)
    keys = jax.random.split(root, 16)

    # torch-layout weights (out_features, in_features); biases 1-D
    Wk = uniform_init(keys[0], (NUM_HEADS, HEAD_SIZE, EMBED), EMBED)            # key (no bias)
    Wq = uniform_init(keys[1], (NUM_HEADS, HEAD_SIZE, EMBED), EMBED)            # query (no bias)
    Wv = uniform_init(keys[2], (NUM_HEADS, HEAD_SIZE, EMBED), EMBED)            # values (no bias)
    Wo = uniform_init(keys[3], (NUM_HEADS, HEAD_OUTPUT_DIM, HEAD_SIZE), HEAD_SIZE)  # output_layer (no bias)
    Wlb = uniform_init(keys[4], (EMBED, NUM_HEADS * HEAD_OUTPUT_DIM), NUM_HEADS * HEAD_OUTPUT_DIM)  # linear_both
    W1 = uniform_init(keys[5], (INNER, EMBED), EMBED)                           # ffwd linear 1
    b1 = uniform_init(keys[6], (INNER,), EMBED)
    W2 = uniform_init(keys[7], (EMBED, INNER), INNER)                           # ffwd linear 2
    b2 = uniform_init(keys[8], (EMBED,), INNER)
    # TODO(synk): Head.enc_layer and the nn.Dropout modules are defined but never
    # used in forward(); omitted (exactly matches the PyTorch forward pass).

    pe = make_position_encoding(CONTEXT_LEN, EMBED)                             # (C, 2)
    params = pack_params(Wk, Wq, Wv, Wo, Wlb, W1, b1, W2, b2, pe, BATCH)

    # deterministic input
    x = jax.random.normal(jax.random.PRNGKey(42), (BATCH, CONTEXT_LEN, EMBED), jnp.float32)

    out = transformer_block(x, params)
    out = jax.block_until_ready(out)

    ref = reference(x, pe, Wk, Wq, Wv, Wo, Wlb, W1, b1, W2, b2)
    assert out.shape == ref.shape == (BATCH, CONTEXT_LEN, EMBED)
    # exact softmax restored -> tight tolerance again
    assert jnp.allclose(out, ref, atol=1e-4, rtol=1e-4), "mismatch vs reference"

    print("KERNEL_OK")
</pallas_src>

<mosaic_0001>
module attributes {stable_mosaic.version = 11 : i64} {
  func.func @transformer_block_kernel(%arg0: memref<16x128xf32, #tpu.memory_space<vmem>>, %arg1: memref<88x128xf32, #tpu.memory_space<vmem>>, %arg2: memref<16x128xf32, #tpu.memory_space<vmem>>, %arg3: memref<16x16xf32, #tpu.memory_space<vmem>>) attributes {dimension_semantics = [], scalar_prefetch = 0 : i64, scratch_operands = 1 : i64, tpu.core_type = #tpu.core_type<tc>} {
    %c0 = arith.constant 0 : index
    %c0_0 = arith.constant 0 : index
    %0 = vector.load %arg0[%c0, %c0_0] : memref<16x128xf32, #tpu.memory_space<vmem>>, vector<16x128xf32>
    %c0_1 = arith.constant 0 : index
    %c0_2 = arith.constant 0 : index
    %1 = vector.load %arg1[%c0_1, %c0_2] : memref<88x128xf32, #tpu.memory_space<vmem>>, vector<2x128xf32>
    %c8 = arith.constant 8 : index
    %c0_3 = arith.constant 0 : index
    %2 = vector.load %arg1[%c8, %c0_3] : memref<88x128xf32, #tpu.memory_space<vmem>>, vector<16x128xf32>
    %c24 = arith.constant 24 : index
    %c0_4 = arith.constant 0 : index
    %3 = vector.load %arg1[%c24, %c0_4] : memref<88x128xf32, #tpu.memory_space<vmem>>, vector<2x128xf32>
    %c32 = arith.constant 32 : index
    %c0_5 = arith.constant 0 : index
    %4 = vector.load %arg1[%c32, %c0_5] : memref<88x128xf32, #tpu.memory_space<vmem>>, vector<1x128xf32>
    %c40 = arith.constant 40 : index
    %c0_6 = arith.constant 0 : index
    %5 = vector.load %arg1[%c40, %c0_6] : memref<88x128xf32, #tpu.memory_space<vmem>>, vector<8x128xf32>
    %c48 = arith.constant 48 : index
    %c0_7 = arith.constant 0 : index
    %6 = vector.load %arg1[%c48, %c0_7] : memref<88x128xf32, #tpu.memory_space<vmem>>, vector<1x128xf32>
    %c56 = arith.constant 56 : index
    %c0_8 = arith.constant 0 : index
    %7 = vector.load %arg1[%c56, %c0_8] : memref<88x128xf32, #tpu.memory_space<vmem>>, vector<16x128xf32>
    %c72 = arith.constant 72 : index
    %c0_9 = arith.constant 0 : index
    %8 = vector.load %arg1[%c72, %c0_9] : memref<88x128xf32, #tpu.memory_space<vmem>>, vector<16x16xf32>
    %9 = arith.addf %0, %7 : vector<16x128xf32>
    %10 = vector.extract_strided_slice %9 {offsets = [0, 0], sizes = [16, 1], strides = [1, 1]} : vector<16x128xf32> to vector<16x1xf32>
    %11 = vector.extract_strided_slice %1 {offsets = [0, 0], sizes = [1, 128], strides = [1, 1]} : vector<2x128xf32> to vector<1x128xf32>
    %12 = vector.broadcast %10 : vector<16x1xf32> to vector<16x128xf32>
    %13 = vector.broadcast %11 : vector<1x128xf32> to vector<16x128xf32>
    %14 = arith.mulf %12, %13 : vector<16x128xf32>
    %15 = vector.extract_strided_slice %9 {offsets = [0, 1], sizes = [16, 1], strides = [1, 1]} : vector<16x128xf32> to vector<16x1xf32>
    %16 = vector.extract_strided_slice %1 {offsets = [1, 0], sizes = [1, 128], strides = [1, 1]} : vector<2x128xf32> to vector<1x128xf32>
    %17 = vector.broadcast %15 : vector<16x1xf32> to vector<16x128xf32>
    %18 = vector.broadcast %16 : vector<1x128xf32> to vector<16x128xf32>
    %19 = arith.mulf %17, %18 : vector<16x128xf32>
    %20 = arith.addf %14, %19 : vector<16x128xf32>
    %21 = vector.extract_strided_slice %20 {offsets = [0, 0], sizes = [16, 8], strides = [1, 1]} : vector<16x128xf32> to vector<16x8xf32>
    %22 = vector.extract_strided_slice %20 {offsets = [0, 16], sizes = [16, 8], strides = [1, 1]} : vector<16x128xf32> to vector<16x8xf32>
    %23 = vector.extract_strided_slice %20 {offsets = [0, 32], sizes = [16, 8], strides = [1, 1]} : vector<16x128xf32> to vector<16x8xf32>
    %cst = arith.constant dense<0.000000e+00> : vector<16x16xf32>
    %24 = tpu.matmul %21, %22, %cst {dimension_numbers = #tpu.dot_dimension_numbers<[1], [1], [0], [0], [0, 0, 1, 0], [], []>} : vector<16x8xf32>, vector<16x8xf32>, vector<16x16xf32> -> vector<16x16xf32>
    %cst_10 = arith.constant 0.353553385 : f32
    %25 = vector.broadcast %cst_10 : f32 to vector<16x16xf32>
    %26 = arith.mulf %24, %25 : vector<16x16xf32>
    %27 = arith.addf %26, %8 : vector<16x16xf32>
    %cst_11 = arith.constant dense<0xFF800000> : vector<16xf32>
    %28 = vector.multi_reduction <maximumf>, %27, %cst_11 [1] : vector<16x16xf32> to vector<16xf32>
    %29 = vector.shape_cast %28 : vector<16xf32> to vector<16x1xf32>
    %30 = vector.broadcast %29 : vector<16x1xf32> to vector<16x16xf32>
    %31 = arith.subf %27, %30 : vector<16x16xf32>
    %32 = math.exp %31 : vector<16x16xf32>
    %cst_12 = arith.constant dense<0.000000e+00> : vector<16xf32>
    %33 = vector.multi_reduction <add>, %32, %cst_12 [1] : vector<16x16xf32> to vector<16xf32>
    %34 = vector.shape_cast %33 : vector<16xf32> to vector<16x1xf32>
    %35 = vector.broadcast %34 : vector<16x1xf32> to vector<16x16xf32>
    %36 = arith.divf %32, %35 : vector<16x16xf32>
    %cst_13 = arith.constant dense<0.000000e+00> : vector<16x8xf32>
    %37 = tpu.matmul %36, %23, %cst_13 {dimension_numbers = #tpu.dot_dimension_numbers<[1], [0], [0], [1], [0, 0, 1, 1], [], []>} : vector<16x16xf32>, vector<16x8xf32>, vector<16x8xf32> -> vector<16x8xf32>
    %c0_14 = arith.constant 0 : index
    %c0_15 = arith.constant 0 : index
    %38 = vector.load %arg3[%c0_14, %c0_15] : memref<16x16xf32, #tpu.memory_space<vmem>>, vector<16x8xf32>
    tpu.vector_store %arg3[%c0_14, %c0_15], %37 {strides = array<i32>} : memref<16x16xf32, #tpu.memory_space<vmem>>, vector<16x8xf32>,
    %39 = vector.extract_strided_slice %20 {offsets = [0, 8], sizes = [16, 8], strides = [1, 1]} : vector<16x128xf32> to vector<16x8xf32>
    %40 = vector.extract_strided_slice %20 {offsets = [0, 24], sizes = [16, 8], strides = [1, 1]} : vector<16x128xf32> to vector<16x8xf32>
    %41 = vector.extract_strided_slice %20 {offsets = [0, 40], sizes = [16, 8], strides = [1, 1]} : vector<16x128xf32> to vector<16x8xf32>
    %cst_16 = arith.constant dense<0.000000e+00> : vector<16x16xf32>
    %42 = tpu.matmul %39, %40, %cst_16 {dimension_numbers = #tpu.dot_dimension_numbers<[1], [1], [0], [0], [0, 0, 1, 0], [], []>} : vector<16x8xf32>, vector<16x8xf32>, vector<16x16xf32> -> vector<16x16xf32>
    %cst_17 = arith.constant 0.353553385 : f32
    %43 = vector.broadcast %cst_17 : f32 to vector<16x16xf32>
    %44 = arith.mulf %42, %43 : vector<16x16xf32>
    %45 = arith.addf %44, %8 : vector<16x16xf32>
    %cst_18 = arith.constant dense<0xFF800000> : vector<16xf32>
    %46 = vector.multi_reduction <maximumf>, %45, %cst_18 [1] : vector<16x16xf32> to vector<16xf32>
    %47 = vector.shape_cast %46 : vector<16xf32> to vector<16x1xf32>
    %48 = vector.broadcast %47 : vector<16x1xf32> to vector<16x16xf32>
    %49 = arith.subf %45, %48 : vector<16x16xf32>
    %50 = math.exp %49 : vector<16x16xf32>
    %cst_19 = arith.constant dense<0.000000e+00> : vector<16xf32>
    %51 = vector.multi_reduction <add>, %50, %cst_19 [1] : vector<16x16xf32> to vector<16xf32>
    %52 = vector.shape_cast %51 : vector<16xf32> to vector<16x1xf32>
    %53 = vector.broadcast %52 : vector<16x1xf32> to vector<16x16xf32>
    %54 = arith.divf %50, %53 : vector<16x16xf32>
    %cst_20 = arith.constant dense<0.000000e+00> : vector<16x8xf32>
    %55 = tpu.matmul %54, %41, %cst_20 {dimension_numbers = #tpu.dot_dimension_numbers<[1], [0], [0], [1], [0, 0, 1, 1], [], []>} : vector<16x16xf32>, vector<16x8xf32>, vector<16x8xf32> -> vector<16x8xf32>
    %c0_21 = arith.constant 0 : index
    %c8_22 = arith.constant 8 : index
    %56 = vector.load %arg3[%c0_21, %c8_22] : memref<16x16xf32, #tpu.memory_space<vmem>>, vector<16x8xf32>
    tpu.vector_store %arg3[%c0_21, %c8_22], %55 {strides = array<i32>} : memref<16x16xf32, #tpu.memory_space<vmem>>, vector<16x8xf32>,
    %c0_23 = arith.constant 0 : index
    %c0_24 = arith.constant 0 : index
    %57 = vector.load %arg3[%c0_23, %c0_24] : memref<16x16xf32, #tpu.memory_space<vmem>>, vector<16x16xf32>
    %cst_25 = arith.constant dense<0.000000e+00> : vector<16x128xf32>
    %58 = tpu.matmul %57, %2, %cst_25 {dimension_numbers = #tpu.dot_dimension_numbers<[1], [0], [0], [1], [0, 0, 1, 1], [], []>} : vector<16x16xf32>, vector<16x128xf32>, vector<16x128xf32> -> vector<16x128xf32>
    %59 = arith.addf %0, %58 : vector<16x128xf32>
    %60 = vector.extract_strided_slice %59 {offsets = [0, 0], sizes = [16, 1], strides = [1, 1]} : vector<16x128xf32> to vector<16x1xf32>
    %61 = vector.extract_strided_slice %3 {offsets = [0, 0], sizes = [1, 128], strides = [1, 1]} : vector<2x128xf32> to vector<1x128xf32>
    %62 = vector.broadcast %60 : vector<16x1xf32> to vector<16x128xf32>
    %63 = vector.broadcast %61 : vector<1x128xf32> to vector<16x128xf32>
    %64 = arith.mulf %62, %63 : vector<16x128xf32>
    %65 = vector.extract_strided_slice %59 {offsets = [0, 1], sizes = [16, 1], strides = [1, 1]} : vector<16x128xf32> to vector<16x1xf32>
    %66 = vector.extract_strided_slice %3 {offsets = [1, 0], sizes = [1, 128], strides = [1, 1]} : vector<2x128xf32> to vector<1x128xf32>
    %67 = vector.broadcast %65 : vector<16x1xf32> to vector<16x128xf32>
    %68 = vector.broadcast %66 : vector<1x128xf32> to vector<16x128xf32>
    %69 = arith.mulf %67, %68 : vector<16x128xf32>
    %70 = arith.addf %64, %69 : vector<16x128xf32>
    %71 = vector.broadcast %4 : vector<1x128xf32> to vector<16x128xf32>
    %72 = arith.addf %70, %71 : vector<16x128xf32>
    %cst_26 = arith.constant 0.000000e+00 : f32
    %73 = vector.broadcast %cst_26 : f32 to vector<16x128xf32>
    %74 = arith.maximumf %72, %73 : vector<16x128xf32>
    %75 = vector.extract_strided_slice %74 {offsets = [0, 0], sizes = [16, 8], strides = [1, 1]} : vector<16x128xf32> to vector<16x8xf32>
    %cst_27 = arith.constant dense<0.000000e+00> : vector<16x128xf32>
    %76 = tpu.matmul %75, %5, %cst_27 {dimension_numbers = #tpu.dot_dimension_numbers<[1], [0], [0], [1], [0, 0, 1, 1], [], []>} : vector<16x8xf32>, vector<8x128xf32>, vector<16x128xf32> -> vector<16x128xf32>
    %77 = vector.broadcast %6 : vector<1x128xf32> to vector<16x128xf32>
    %78 = arith.addf %76, %77 : vector<16x128xf32>
    %79 = arith.addf %59, %78 : vector<16x128xf32>
    %c0_28 = arith.constant 0 : index
    %c0_29 = arith.constant 0 : index
    %80 = vector.load %arg2[%c0_28, %c0_29] : memref<16x128xf32, #tpu.memory_space<vmem>>, vector<16x128xf32>
    tpu.vector_store %arg2[%c0_28, %c0_29], %79 {strides = array<i32>} : memref<16x128xf32, #tpu.memory_space<vmem>>, vector<16x128xf32>,
    return
  }
}

</mosaic_0001>

<bundles_post_ra>
// kernel: tpu_custom_call.1
= control target key start
LH: loop header
LB: loop body
LE: loop exit
PB: predicated region body
PF: predicated region fallthrough
CT: control target
= control target key end

     0   :  { %7 = vsyncpa [#allocation4], 0  ;;  %s1114_s0 = inlined_call_operand.hbm [shape: f32[16,128], index: 0, kind: input, shape index: {}]   ;;  %s1115_s1 = inlined_call_operand.hbm [shape: f32[88,128], index: 1, kind: input, shape index: {}]   ;;  %s1116_s2 = inlined_call_operand.hbm [shape: f32[16,128], index: 2, kind: output, shape index: {}]  }
   0x1   :  { %8 = vsyncpa [#allocation7], 0 }
   0x2   :  { %9 = vsyncpa [#allocation5], 0  ;;  %s968_s9 = smov [#allocation3]   ;;  %s896_s13 = scalar_lea.hbm %s1114_s0, 256 }
   0x3   :  { %s15_s10 = sshll.u32 %s968_s9, 4  ;;  %p897_p0 = scmp.ne.s32.totalorder %s1114_s0, %s896_s13  ;;  %s16_s10 = int_to_ptr.vmem [resolvable:$true] %s15_s10 }
   0x4   :  { %p900_p1 = scmp.lt.u32.totalorder %s896_s13, %s1114_s0 }
   0x6   :  { %p902_p2 = pnand %p900_p1, %p897_p0 }
   0x8   :  { %905 = shalt.err (!%p902_p2)
}
   0x9   :  { %s906_s18 = scalar_lea.vmem %s16_s10, 256  ;;  %p911_p4 = scmp.lt.s32.totalorder %s16_s10, %s16_s10 }
   0xa   :  { %p907_p3 = scmp.ne.s32.totalorder %s16_s10, %s906_s18  ;;  %p912_p5 = scmp.lt.s32.totalorder %s906_s18, %s906_s18 }
   0xc   :  { %p913_p6 = por %p912_p5, %p911_p4 }
   0xe   :  { %p914_p7 = pnand %p913_p6, %p907_p3 }
  0x10   :  { %917 = shalt.err (!%p914_p7)
}
  0x11   :  { %s969_s19 = smov 128   ;;  %s970_s20 = smov 8  }
  0x12   :  { %21 = dma.hbm_to_vmem [thread:$0]  %s1114_s0, 256, %s16_s10, [#allocation4], %s969_s19, %s969_s19, %s970_s20  }
  0x13   :  { %s971_s23 = smov [#allocation6]   ;;  %s918_s27 = scalar_lea.hbm %s1115_s1, 1408 }
  0x14   :  { %s27_s24 = sshll.u32 %s971_s23, 4  ;;  %p919_p8 = scmp.ne.s32.totalorder %s1115_s1, %s918_s27  ;;  %s28_s24 = int_to_ptr.vmem [resolvable:$true] %s27_s24 }
  0x15   :  { %p922_p9 = scmp.lt.u32.totalorder %s918_s27, %s1115_s1 }
  0x17   :  { %p924_p10 = pnand %p922_p9, %p919_p8 }
  0x19   :  { %927 = shalt.err (!%p924_p10)
}
  0x1a   :  { %s928_s4 = scalar_lea.vmem %s28_s24, 1408  ;;  %p933_p12 = scmp.lt.s32.totalorder %s28_s24, %s28_s24 }
  0x1b   :  { %p929_p11 = scmp.ne.s32.totalorder %s28_s24, %s928_s4  ;;  %p934_p13 = scmp.lt.s32.totalorder %s928_s4, %s928_s4 }
  0x1d   :  { %p935_p0 = por %p934_p13, %p933_p12 }
  0x1f   :  { %p936_p1 = pnand %p935_p0, %p929_p11 }
  0x21   :  { %939 = shalt.err (!%p936_p1)
}
  0x22   :  { %33 = dma.hbm_to_vmem [thread:$0]  %s1115_s1, 1408, %s28_s24, [#allocation7], %s969_s19, %s969_s19, %s970_s20  }
  0x23   :  { %962 = dma.done.wait [#allocation4], 256  }
  0x24   :  { %963 = vsyncadd [#allocation4], 4294967040 }
  0x25   :  { %964 = dma.done.wait [#allocation7], 1408  }
  0x26   :  { %965 = vsyncadd [#allocation7], 4294965888  ;;  %v972_v0 = vmov 1   ;;  %v973_v1 = vmov 0   ;;  %v1026_v2 = vld [vmem:[#allocation3] sm:$0xff]  ;;  %v49_v3 = vld [vmem:[#allocation6 + $0x38] sm:$0xff]  ;;  %v65_v8 = vlaneseq }
  0x27   :  { %858 = vset.pattern.permute.xlu1 %v972_v0  ;;  %857 = vset.pattern.permute.xlu0 %v973_v1  ;;  %v1028_v4 = vld [vmem:[#allocation3 + $0x8] sm:$0xff]  ;;  %v53_v5 = vadd.f32 %v49_v3, %v1026_v2  ;;  %v50_v6 = vld [vmem:[#allocation6 + $0x40] sm:$0xff]  ;;  %vm93_vm0 = vcmask 64512   ;;  %s974_s1 = smov 112   ;;  %v1055_v32 = vld [vmem:[#allocation6 + $0x50] sm:$0xff]  ;;  %vm181_vm2 = vcmask 130048  }
  0x28   :  { %v54_v7 = vadd.f32 %v50_v6, %v1028_v4  ;;  %v1032_v9 = vshrl.u32 %v65_v8, 7  ;;  %v42_v12 = vld [vmem:[#allocation6] sm:$0x3]  ;;  %vm1046_vm1 = vmpackc.low %vm93_vm0, %vm93_vm0  ;;  %v1057_v35 = vld [vmem:[#allocation6 + $0x48] sm:$0xff]  ;;  %s975_s6 = smov 104   ;;  %s976_s7 = smov 120  }
  0x29   :  { %72 = vperm.xlu1 %858, %v53_v5   ;;  %57 = vperm.xlu0 %857, %v53_v5   ;;  %s977_s8 = smov 96   ;;  %s978_s9 = smov 88   ;;  %vm505_vm3 = vcmask 130112  }
  0x2a   :  { %v81_v10 = vsub.s32 1, %v1032_v9  ;;  %v67_v11 = vsub.s32 0, %v1032_v9  ;;  %v755_v9 = vld [vmem:[#allocation6 + $0x30] ss:$0 sm:$0xff]  ;;  %s979_s10 = smov [#allocation8]  }
  0x2b   :  { %s727_s11 = sshll.u32 %s979_s10, 4  ;;  %s728_s11 = int_to_ptr.vmem [resolvable:$true] %s727_s11 }
  0x2c   :  { %v82_v13 = vrot.slane %v42_v12, %v81_v10  ;;  %v68_v14 = vrot.slane %v42_v12, %v67_v11  ;;  %s940_s12 = scalar_lea.vmem %s728_s11, 256  ;;  %p945_p3 = scmp.lt.s32.totalorder %s728_s11, %s728_s11 }
  0x2d   :  { %76 = vperm.xlu1 %858, %v54_v7   ;;  %62 = vperm.xlu0 %857, %v54_v7   ;;  %p941_p2 = scmp.ne.s32.totalorder %s728_s11, %s940_s12  ;;  %p946_p4 = scmp.lt.s32.totalorder %s940_s12, %s940_s12 }
  0x2f   :  { %p947_p5 = por %p946_p4, %p945_p3 }
  0x31   :  { %p948_p6 = pnand %p947_p5, %p941_p2 }
  0xa8   :  { %v73_v15 = vpop.permute.xlu1 %72  ;;  %v58_v16 = vpop.permute.xlu0 %57 }
  0xa9   :  { %v83_v17 = vmul.f32 %v82_v13, %v73_v15  ;;  %v69_v18 = vmul.f32 %v68_v14, %v58_v16 }
  0xab   :  { %v85_v19 = vadd.f32 %v83_v17, %v69_v18 }
  0xac   :  { %v77_v20 = vpop.permute.xlu1 %76  ;;  %v63_v21 = vpop.permute.xlu0 %62 }
  0xad   :  { %v84_v22 = vmul.f32 %v82_v13, %v77_v20  ;;  %v70_v23 = vmul.f32 %v68_v14, %v63_v21  ;;  %785 = vmatprep.mubr.msk.f32.mxu0 %vm93_vm0, %v85_v19 }
  0xaf   :  { %v86_v24 = vadd.f32 %v84_v22, %v70_v23 }
  0xb1   :  { %v1041_v25 = vpack.i.bf16 %v86_v24, %v85_v19 }
  0xb3   :  { %860 = vrot.lane.b32.xlu0 %v1041_v25, %s974_s1 }
 0x125   :  { %v861_v26 = vpop.permute.xlu0 %860 }
 0x126   :  { %v863_v27 = vunpack.i.h.bf16 %v861_v26  ;;  %v862_v28 = vunpack.i.l.bf16 %v861_v26 }
 0x128   :  { %v821_v30 = vpack.c.bf16 %v863_v27, %v862_v28 }
 0x12a   :  { %823 = vmatprep.subr.msk.bf16.mxu0 %vm1046_vm1, %v821_v30 }
 0x12b   :  { %826 = vmatpush3.bf16.xpose.msk.msra.mxu0 %vm1046_vm1, %v821_v30 }
 0x132   :  { %786 = vmatmul.mubr.msk.f32.vlgmr.msra.gmra.mrb[0].mxu0 %vm93_vm0, %v86_v24 }
 0x205   :  { %v787_v31 = vpop.f32.mrb[0].mxu0 }
 0x206   :  { %v178_v33 = vmul.f32 0.35355338, %v787_v31  ;;  %v168_v34 = vpop.f32.mrb[1].mxu0 }
 0x207   :  { %v177_v36 = vmul.f32 0.35355338, %v168_v34 }
 0x208   :  { %v180_v37 = vadd.f32 %v178_v33, %v1055_v32 }
 0x209   :  { %v179_v38 = vadd.f32 %v177_v36, %v1057_v35 }
 0x20a   :  { %v185_v39 = vsel %vm181_vm2, %v180_v37, -inf }
 0x20b   :  { %186 = vmax.xlane.f32.xlu0 %v185_v39  ;;  %v182_v40 = vsel %vm181_vm2, %v179_v38, -inf }
 0x20c   :  { %183 = vmax.xlane.f32.xlu1 %v182_v40  ;;  %v43_v40 = vld [vmem:[#allocation6 + $0x8] sm:$0xff] }
 0x298   :  { %v187_v41 = vpop.xlane.xlu0 %186 }
 0x299   :  { %v189_v42 = vsub.f32 %v180_v37, %v187_v41  ;;  %v184_v43 = vpop.xlane.xlu1 %183 }
 0x29a   :  { %v188_v44 = vsub.f32 %v179_v38, %v184_v43 }
 0x29b   :  { %v192_v45 = vmul.f32 1.442695, %v189_v42 }
 0x29c   :  { %v190_v46 = vmul.f32 1.442695, %v188_v44 }
 0x29d   :  { %880 = vpow2.f32 %v192_v45 }
 0x29e   :  { %882 = vpow2.f32 %v190_v46 }
 0x2a7   :  { %v881_v47 = vpop.eup %880 }
 0x2a8   :  { %v883_v48 = vpop.eup %882  ;;  %v197_v49 = vsel %vm181_vm2, %v881_v47, 0.0 }
 0x2a9   :  { %198 = vadd.xlane.f32.xlu1 %v197_v49  ;;  %v194_v50 = vsel %vm181_vm2, %v883_v48, 0.0 }
 0x2aa   :  { %195 = vadd.xlane.f32.xlu0 %v194_v50 }
 0x2ba   :  { %870 = vrot.lane.b32.xlu1 %v1041_v25, %s975_s6 }
 0x2be   :  { %293 = vrot.lane.b32.xlu1 %v85_v19, %s976_s7 }
 0x2c0   :  { %865 = vrot.lane.b32.xlu0 %v1041_v25, %s977_s8 }
 0x2c4   :  { %295 = vrot.lane.b32.xlu0 %v86_v24, %s976_s7 }
 0x336   :  { %v199_v51 = vpop.xlane.xlu1 %198 }
 0x337   :  { %884 = vrcp.f32 %v199_v51  ;;  %v196_v52 = vpop.xlane.xlu0 %195 }
 0x338   :  { %886 = vrcp.f32 %v196_v52  ;;  %v47_v52 = vld [vmem:[#allocation6 + $0x28] sm:$0xff] }
 0x33a   :  { %v871_v53 = vpop.permute.xlu1 %870 }
 0x33b   :  { %v866_v54 = vpop.permute.xlu0 %865  ;;  %v873_v55 = vunpack.i.h.bf16 %v871_v53  ;;  %v872_v56 = vunpack.i.l.bf16 %v871_v53  ;;  %v45_v53 = vld [vmem:[#allocation6 + $0x18] sm:$0x3] }
 0x33c   :  { %v868_v57 = vunpack.i.h.bf16 %v866_v54  ;;  %v867_v58 = vunpack.i.l.bf16 %v866_v54  ;;  %v620_v54 = vrot.slane %v45_v53, %v81_v10 }
 0x33d   :  { %v831_v60 = vpack.c.bf16 %v873_v55, %v872_v56  ;;  %v606_v55 = vrot.slane %v45_v53, %v67_v11 }
 0x33e   :  { %v827_v59 = vpack.c.bf16 %v868_v57, %v867_v58  ;;  %v294_v3 = vpop.permute.xlu1 %293 }
 0x33f   :  { %v296_v5 = vpop.permute.xlu0 %295 }
 0x340   :  { %828 = vmatprep.subr.bf16.mxu1 %v827_v59 }
 0x341   :  { %v885_v61 = vpop.eup %884  ;;  %830 = vmatpush3.bf16.msra.mxu1 %v827_v59  ;;  %v754_v59 = vld [vmem:[#allocation6 + $0x20] ss:$0 sm:$0xff] }
 0x342   :  { %v887_v62 = vpop.eup %886  ;;  %833 = vmatprep.subr.msk.bf16.mxu1 %vm1046_vm1, %v831_v60  ;;  %v203_v1 = vmul.f32 %v885_v61, %v881_v47 }
 0x343   :  { %v201_v63 = vmul.f32 %v887_v62, %v883_v48 }
 0x345   :  { %792 = vmatprep.mubr.msk.f32.mxu1 %vm181_vm2, %v201_v63 }
 0x346   :  { %793 = vmatmul.mubr.msk.f32.vlgmr.msra.gmra.mrb[0].mxu1 %vm181_vm2, %v203_v1 }
 0x347   :  { %799 = vmatprep.mubr.msk.f32.mxu1 %vm93_vm0, %v294_v3 }
 0x34a   :  { %836 = vmatpush3.bf16.xpose.msk.msra.mxu1 %vm1046_vm1, %v831_v60 }
 0x34b   :  { %816 = vmatprep.subr.mxu1 %v47_v52 }
 0x351   :  { %800 = vmatmul.mubr.msk.f32.vlgmr.msra.gmra.mrb[2].mxu1 %vm93_vm0, %v296_v5 }
 0x352   :  { %817 = vmatpush3.msra.mxu1 %v47_v52 }
 0x419   :  { %v794_v6 = vpop.f32.mrb[0].mxu1 }
 0x41a   :  { %292 = vst.msk [vmem:[#allocation2 + $0x8] sm:$0xff] %vm93_vm0, %v794_v6  ;;  %v282_v7 = vpop.f32.mrb[1].mxu1 }
 0x41b   :  { %291 = vst.msk [vmem:[#allocation2] sm:$0xff] %vm93_vm0, %v282_v7 }
 0x424   :  { %v801_v8 = vpop.f32.mrb[2].mxu1 }
 0x425   :  { %v385_v12 = vmul.f32 0.35355338, %v801_v8  ;;  %v375_v13 = vpop.f32.mrb[3].mxu1 }
 0x426   :  { %v384_v14 = vmul.f32 0.35355338, %v375_v13 }
 0x427   :  { %v387_v15 = vadd.f32 %v385_v12, %v1055_v32 }
 0x428   :  { %v386_v16 = vadd.f32 %v384_v14, %v1057_v35 }
 0x429   :  { %v391_v17 = vsel %vm181_vm2, %v387_v15, -inf }
 0x42a   :  { %392 = vmax.xlane.f32.xlu0 %v391_v17  ;;  %v388_v18 = vsel %vm181_vm2, %v386_v16, -inf }
 0x42b   :  { %389 = vmax.xlane.f32.xlu1 %v388_v18 }
 0x4b7   :  { %v393_v19 = vpop.xlane.xlu0 %392 }
 0x4b8   :  { %v395_v20 = vsub.f32 %v387_v15, %v393_v19  ;;  %v390_v21 = vpop.xlane.xlu1 %389 }
 0x4b9   :  { %v394_v22 = vsub.f32 %v386_v16, %v390_v21 }
 0x4ba   :  { %v398_v23 = vmul.f32 1.442695, %v395_v20 }
 0x4bb   :  { %v396_v24 = vmul.f32 1.442695, %v394_v22 }
 0x4bc   :  { %888 = vpow2.f32 %v398_v23 }
 0x4bd   :  { %890 = vpow2.f32 %v396_v24 }
 0x4c6   :  { %v889_v26 = vpop.eup %888 }
 0x4c7   :  { %v891_v27 = vpop.eup %890  ;;  %v403_v28 = vsel %vm181_vm2, %v889_v26, 0.0 }
 0x4c8   :  { %404 = vadd.xlane.f32.xlu1 %v403_v28  ;;  %v400_v29 = vsel %vm181_vm2, %v891_v27, 0.0 }
 0x4c9   :  { %401 = vadd.xlane.f32.xlu0 %v400_v29 }
 0x4df   :  { %875 = vrot.lane.b32.xlu0 %v1041_v25, %s978_s9  ;;  %v44_v25 = vld [vmem:[#allocation6 + $0x10] sm:$0xff] }
 0x4e0   :  { %v841_v41 = vpack.c.bf16 %v44_v25, %v43_v40 }
 0x555   :  { %v405_v30 = vpop.xlane.xlu1 %404 }
 0x556   :  { %892 = vrcp.f32 %v405_v30  ;;  %v402_v31 = vpop.xlane.xlu0 %401 }
 0x557   :  { %894 = vrcp.f32 %v402_v31 }
 0x55a   :  { %v876_v32 = vpop.permute.xlu0 %875 }
 0x55b   :  { %v878_v33 = vunpack.i.h.bf16 %v876_v32  ;;  %v877_v34 = vunpack.i.l.bf16 %v876_v32 }
 0x55d   :  { %v837_v35 = vpack.c.bf16 %v878_v33, %v877_v34 }
 0x55f   :  { %838 = vmatprep.subr.bf16.mxu0 %v837_v35 }
 0x560   :  { %v893_v36 = vpop.eup %892  ;;  %840 = vmatpush3.bf16.msra.mxu0 %v837_v35 }
 0x561   :  { %v895_v37 = vpop.eup %894  ;;  %v409_v39 = vmul.f32 %v893_v36, %v889_v26  ;;  %842 = vmatprep.subr.bf16.mxu0 %v841_v41 }
 0x562   :  { %v407_v38 = vmul.f32 %v895_v37, %v891_v27 }
 0x564   :  { %806 = vmatprep.mubr.msk.f32.mxu0 %vm181_vm2, %v407_v38 }
 0x565   :  { %807 = vmatmul.mubr.msk.f32.vlgmr.msra.gmra.mrb[2].mxu0 %vm181_vm2, %v409_v39 }
 0x566   :  { %844 = vmatpush3.bf16.msra.mxu0 %v841_v41 }
 0x638   :  { %v808_v42 = vpop.f32.mrb[2].mxu0 }
 0x639   :  { %v488_v43 = vpop.f32.mrb[3].mxu0 }
 0x63a   :  { %499 = vrot.lane.b32.xlu1 %v488_v43, %s970_s20 }
 0x63e   :  { %501 = vrot.lane.b32.xlu1 %v808_v42, %s970_s20 }
 0x6ac   :  { %v500_v44 = vpop.permute.xlu1 %499 }
 0x6ad   :  { %506 = vst.msk [vmem:[#allocation2] sm:$0xff] %vm505_vm3, %v500_v44 }
 0x6b0   :  { %v502_v45 = vpop.permute.xlu1 %501 }
 0x6b1   :  { %507 = vst.msk [vmem:[#allocation2 + $0x8] sm:$0xff] %vm505_vm3, %v502_v45 }
 0x6b4   :  { %v508_v46 = vld [vmem:[#allocation2] sm:$0xff] }
 0x6b5   :  { %813 = vmatprep.mubr.msk.f32.mxu0 %vm181_vm2, %v508_v46 }
 0x6b8   :  { %v509_v47 = vld [vmem:[#allocation2 + $0x8] sm:$0xff] }
 0x6b9   :  { %814 = vmatmul.mubr.msk.f32.vlgmr.msra.gmra.mrb[4].mxu0 %vm181_vm2, %v509_v47 }
 0x78c   :  { %v815_v48 = vpop.f32.mrb[4].mxu0 }
 0x78d   :  { %v582_v49 = vpop.f32.mrb[5].mxu0  ;;  %v592_v51 = vadd.f32 %v815_v48, %v1028_v4 }
 0x78e   :  { %v591_v50 = vadd.f32 %v582_v49, %v1026_v2 }
 0x790   :  { %610 = vperm.xlu1 %858, %v591_v50   ;;  %595 = vperm.xlu0 %857, %v591_v50  }
 0x794   :  { %614 = vperm.xlu1 %858, %v592_v51   ;;  %600 = vperm.xlu0 %857, %v592_v51  }
 0x798   :  { %879 = vset.pattern.permute.xlu0 %v972_v0 }
 0x80f   :  { %v611_v56 = vpop.permute.xlu1 %610  ;;  %v596_v2 = vpop.permute.xlu0 %595 }
 0x810   :  { %v621_v57 = vmul.f32 %v620_v54, %v611_v56  ;;  %v607_v58 = vmul.f32 %v606_v55, %v596_v2 }
 0x812   :  { %v623_v4 = vadd.f32 %v621_v57, %v607_v58 }
 0x813   :  { %v615_v60 = vpop.permute.xlu1 %614  ;;  %v601_v61 = vpop.permute.xlu0 %600 }
 0x814   :  { %v629_v62 = vadd.f32 %v754_v59, %v623_v4  ;;  %v622_v0 = vmul.f32 %v620_v54, %v615_v60  ;;  %v608_v63 = vmul.f32 %v606_v55, %v601_v61 }
 0x816   :  { %v631_v1 = vmax.f32 %v629_v62, 0.0  ;;  %v624_v3 = vadd.f32 %v622_v0, %v608_v63 }
 0x818   :  { %v630_v5 = vadd.f32 %v754_v59, %v624_v3  ;;  %818 = vmatprep.mubr.msk.f32.mxu1 %vm93_vm0, %v631_v1 }
 0x81a   :  { %v632_v10 = vmax.f32 %v630_v5, 0.0 }
 0x81c   :  { %819 = vmatmul.mubr.msk.f32.vlgmr.msra.gmra.mrb[4].mxu1 %vm93_vm0, %v632_v10 }
 0x8ef   :  { %v820_v11 = vpop.f32.mrb[4].mxu1 }
 0x8f0   :  { %v715_v6 = vadd.f32 %v820_v11, %v755_v9  ;;  %v709_v7 = vpop.f32.mrb[5].mxu1 }
 0x8f1   :  { %v710_v8 = vadd.f32 %v755_v9, %v709_v7 }
 0x8f2   :  { %v719_v12 = vadd.f32 %v715_v6, %v592_v51 }
 0x8f3   :  { %v718_v13 = vadd.f32 %v710_v8, %v591_v50 }
 0x8f4   :  { %721 = vst [vmem:[#allocation8 + $0x8] sm:$0xff] %v719_v12 }
 0x8f5   :  { %720 = vst [vmem:[#allocation8] sm:$0xff] %v718_v13 }
 0x8f6   :  { %951 = shalt.err (!%p948_p6)
}
 0x8f7   :  { %s952_s15 = scalar_lea.hbm %s1116_s2, 256 }
 0x8f8   :  { %p953_p7 = scmp.ne.s32.totalorder %s1116_s2, %s952_s15  ;;  %p956_p8 = scmp.lt.u32.totalorder %s952_s15, %s1116_s2 }
 0x8fa   :  { %p958_p9 = pnand %p956_p8, %p953_p7 }
 0x8fc   :  { %961 = shalt.err (!%p958_p9)
}
 0x8fd   :  { %733 = dma.vmem_to_hbm [thread:$0]  %s728_s11, 256, %s1116_s2, [#allocation5], %s969_s19, %s969_s19, %s970_s20  }
 0x8fe   :  { %966 = dma.done.wait [#allocation5], 256  }
 0x8ff   :  { %967 = vsyncadd [#allocation5], 4294967040 }
 0x900   :  { %737 = vsyncpa [#allocation4], 1 }
 0x901   :  { %738 = vsyncpa [#allocation7], 1 }
 0x902   :  { %739 = vsyncpa [#allocation5], 1 }

</bundles_post_ra>
